<compile_context>
chip_gen: v7x
topology: tpu7x:2x2x1
jax: 0.10.0
libtpu: 0.0.40
codegen_flags: <defaults>
</compile_context>

<pallas_src>
import functools

import jax
import jax.numpy as jnp
from jax.experimental import pallas as pl
from jax.experimental.pallas import tpu as pltpu


# ----------------------------------------------------------------------------
# Pallas kernel
# ----------------------------------------------------------------------------

def _contrastive_loss_kernel(o1_ref, o2_ref, lbl_ref, loss_ref, acc_ref, *,
                             margin, eps, n_valid, block_b, need_mask):
    """Fused contrastive loss over one batch tile; accumulates across the grid."""
    i = pl.program_id(0)

    @pl.when(i == 0)
    def _():
        acc_ref[0] = jnp.float32(0.0)

    diff = o1_ref[...] - o2_ref[...] + eps                     # (TB, D)  VPU
    sq_dist = jnp.sum(diff * diff, axis=-1, keepdims=True)     # (TB, 1)  XLU reduce
    dist = jnp.sqrt(sq_dist)                                   # EUP
    lbl = lbl_ref[...]                                         # (TB, 1)
    hinge = jnp.maximum(margin - dist, 0.0)
    per_row = (1.0 - lbl) * sq_dist + lbl * hinge * hinge      # (TB, 1)

    if need_mask:
        # Zero out rows that were added by batch padding in the wrapper.
        row = i * block_b + jax.lax.broadcasted_iota(jnp.int32, (block_b, 1), 0)
        per_row = jnp.where(row < n_valid, per_row, 0.0)

    acc_ref[0] = acc_ref[0] + jnp.sum(per_row)

    @pl.when(i == pl.num_programs(0) - 1)
    def _():
        loss_ref[0] = acc_ref[0] * (1.0 / n_valid)


# ----------------------------------------------------------------------------
# Wrapper
# ----------------------------------------------------------------------------

def _pick_block_b(B, D):
    """Largest multiple-of-8 batch tile that (a) keeps the double-buffered f32
    inputs well under the scoped VMEM limit on all generations and (b) leaves
    >=2 grid steps when the batch allows, so input DMA pipelines."""
    b8 = pl.cdiv(B, 8) * 8
    vmem_cap = max(8, ((8 << 20) // (16 * D)) // 8 * 8)   # 2 ins x 2 bufs x 4B
    if b8 <= 8:
        tile = 8
    else:
        tile = max(8, (b8 // 2) // 8 * 8)                 # at least 2 grid steps
    return min(tile, vmem_cap, 256)


@functools.partial(jax.jit, static_argnames=("margin", "eps", "block_b"))
def contrastive_loss(output1, output2, label, margin=0.5, eps=1e-6, block_b=None):
    o1 = output1.astype(jnp.float32)
    o2 = output2.astype(jnp.float32)
    B, D = o1.shape
    lbl = label.reshape(B, 1).astype(jnp.float32)

    if block_b is None:
        block_b = _pick_block_b(B, D)

    Bp = pl.cdiv(B, block_b) * block_b
    if Bp != B:
        pad = Bp - B
        o1 = jnp.pad(o1, ((0, pad), (0, 0)))
        o2 = jnp.pad(o2, ((0, pad), (0, 0)))
        lbl = jnp.pad(lbl, ((0, pad), (0, 0)))

    kernel = functools.partial(
        _contrastive_loss_kernel,
        margin=float(margin), eps=float(eps),
        n_valid=B, block_b=block_b, need_mask=(Bp != B))

    loss = pl.pallas_call(
        kernel,
        out_shape=jax.ShapeDtypeStruct((1,), jnp.float32),
        grid=(Bp // block_b,),
        in_specs=[
            pl.BlockSpec((block_b, D), lambda i: (i, 0)),
            pl.BlockSpec((block_b, D), lambda i: (i, 0)),
            pl.BlockSpec((block_b, 1), lambda i: (i, 0)),
        ],
        out_specs=pl.BlockSpec(memory_space=pltpu.MemorySpace.SMEM),
        scratch_shapes=[pltpu.SMEM((1,), jnp.float32)],
        compiler_params=pltpu.CompilerParams(
            dimension_semantics=("arbitrary",)),   # reduction axis
    )(o1, o2, lbl)
    return loss[0]


# ----------------------------------------------------------------------------
# Main
# ----------------------------------------------------------------------------

if __name__ == "__main__":
    key = jax.random.PRNGKey(0)
    k1, k2, k3 = jax.random.split(key, 3)

    # Small embedding pairs, e.g. outputs of a Siamese backbone: (B, D) + labels (B,)
    B, D = 16, 256
    output1 = jax.random.normal(k1, (B, D), jnp.float32)
    output2 = jax.random.normal(k2, (B, D), jnp.float32)
    label = jax.random.bernoulli(k3, 0.5, (B,)).astype(jnp.float32)

    loss = contrastive_loss(output1, output2, label, margin=0.5)
    jax.block_until_ready(loss)

    # Pure-JAX reference (matches torch: pairwise_distance adds eps to the diff).
    d = jnp.sqrt(jnp.sum((output1 - output2 + 1e-6) ** 2, axis=-1))
    ref = jnp.mean((1.0 - label) * d * d
                   + label * jnp.maximum(0.5 - d, 0.0) ** 2)

    assert loss.shape == () and loss.dtype == jnp.float32
    assert bool(jnp.isfinite(loss))
    assert bool(jnp.allclose(loss, ref, rtol=1e-5, atol=1e-5)), (loss, ref)

    # Also exercise a batch that is not a multiple of the tile (masking path).
    loss_odd = contrastive_loss(output1[:5], output2[:5], label[:5], margin=0.5)
    d5, l5 = d[:5], label[:5]
    ref_odd = jnp.mean((1.0 - l5) * d5 * d5 + l5 * jnp.maximum(0.5 - d5, 0.0) ** 2)
    assert bool(jnp.allclose(loss_odd, ref_odd, rtol=1e-5, atol=1e-5)), (loss_odd, ref_odd)

    print("KERNEL_OK")
</pallas_src>

<mosaic_0001>
module attributes {stable_mosaic.version = 11 : i64} {
  func.func @_contrastive_loss_kernel(%arg0: i32, %arg1: memref<8x256xf32, #tpu.memory_space<vmem>>, %arg2: memref<8x256xf32, #tpu.memory_space<vmem>>, %arg3: memref<8x1xf32, #tpu.memory_space<vmem>>, %arg4: memref<1xf32, #tpu.memory_space<smem>>, %arg5: memref<1xf32, #tpu.memory_space<smem>>) attributes {dimension_semantics = [#tpu.dimension_semantics<arbitrary>], iteration_bounds = array<i64: 2>, scalar_prefetch = 0 : i64, scratch_operands = 1 : i64, tpu.core_type = #tpu.core_type<tc>, window_params = [{transform_indices = @transform_0, window_bounds = array<i64: 8, 256>}, {transform_indices = @transform_1, window_bounds = array<i64: 8, 256>}, {transform_indices = @transform_2, window_bounds = array<i64: 8, 1>}, {transform_indices = @transform_3, window_bounds = array<i64: 1>}]} {
    %c0_i32 = arith.constant 0 : i32
    %0 = arith.cmpi eq, %arg0, %c0_i32 : i32
    %1 = arith.extui %0 : i1 to i32
    %c0_i32_0 = arith.constant 0 : i32
    %2 = arith.cmpi ne, %1, %c0_i32_0 : i32
    scf.if %2 {
      %cst_14 = arith.constant 0.000000e+00 : f32
      %c0_15 = arith.constant 0 : index
      %33 = memref.load %arg5[%c0_15] : memref<1xf32, #tpu.memory_space<smem>>
      memref.store %cst_14, %arg5[%c0_15] : memref<1xf32, #tpu.memory_space<smem>>
    } else {
    }
    %c0 = arith.constant 0 : index
    %c0_1 = arith.constant 0 : index
    %3 = vector.load %arg1[%c0, %c0_1] : memref<8x256xf32, #tpu.memory_space<vmem>>, vector<8x256xf32>
    %c0_2 = arith.constant 0 : index
    %c0_3 = arith.constant 0 : index
    %4 = vector.load %arg2[%c0_2, %c0_3] : memref<8x256xf32, #tpu.memory_space<vmem>>, vector<8x256xf32>
    %5 = arith.subf %3, %4 : vector<8x256xf32>
    %cst = arith.constant 9.99999997E-7 : f32
    %6 = vector.broadcast %cst : f32 to vector<8x256xf32>
    %7 = arith.addf %5, %6 : vector<8x256xf32>
    %8 = arith.mulf %7, %7 : vector<8x256xf32>
    %cst_4 = arith.constant dense<0.000000e+00> : vector<8xf32>
    %9 = vector.multi_reduction <add>, %8, %cst_4 [1] : vector<8x256xf32> to vector<8xf32>
    %10 = vector.shape_cast %9 : vector<8xf32> to vector<8x1xf32>
    %11 = math.sqrt %10 : vector<8x1xf32>
    %c0_5 = arith.constant 0 : index
    %c0_6 = arith.constant 0 : index
    %12 = vector.load %arg3[%c0_5, %c0_6] : memref<8x1xf32, #tpu.memory_space<vmem>>, vector<8x1xf32>
    %cst_7 = arith.constant 5.000000e-01 : f32
    %13 = vector.broadcast %cst_7 : f32 to vector<8x1xf32>
    %14 = arith.subf %13, %11 : vector<8x1xf32>
    %cst_8 = arith.constant 0.000000e+00 : f32
    %15 = vector.broadcast %cst_8 : f32 to vector<8x1xf32>
    %16 = arith.maximumf %14, %15 : vector<8x1xf32>
    %cst_9 = arith.constant 1.000000e+00 : f32
    %17 = vector.broadcast %cst_9 : f32 to vector<8x1xf32>
    %18 = arith.subf %17, %12 : vector<8x1xf32>
    %19 = arith.mulf %18, %10 : vector<8x1xf32>
    %20 = arith.mulf %12, %16 : vector<8x1xf32>
    %21 = arith.mulf %20, %16 : vector<8x1xf32>
    %22 = arith.addf %19, %21 : vector<8x1xf32>
    %c0_10 = arith.constant 0 : index
    %23 = memref.load %arg5[%c0_10] : memref<1xf32, #tpu.memory_space<smem>>
    %24 = vector.shape_cast %22 : vector<8x1xf32> to vector<1x8x1xf32>
    %cst_11 = arith.constant dense<0.000000e+00> : vector<1xf32>
    %25 = vector.multi_reduction <add>, %24, %cst_11 [1, 2] : vector<1x8x1xf32> to vector<1xf32>
    %26 = vector.shape_cast %25 : vector<1xf32> to vector<1x1x1xf32>
    %27 = vector.extract %26[0, 0, 0] : f32 from vector<1x1x1xf32>
    %28 = arith.addf %23, %27 : f32
    %c0_12 = arith.constant 0 : index
    %29 = memref.load %arg5[%c0_12] : memref<1xf32, #tpu.memory_space<smem>>
    memref.store %28, %arg5[%c0_12] : memref<1xf32, #tpu.memory_space<smem>>
    %c1_i32 = arith.constant 1 : i32
    %30 = arith.cmpi eq, %arg0, %c1_i32 : i32
    %31 = arith.extui %30 : i1 to i32
    %c0_i32_13 = arith.constant 0 : i32
    %32 = arith.cmpi ne, %31, %c0_i32_13 : i32
    scf.if %32 {
      %c0_14 = arith.constant 0 : index
      %33 = memref.load %arg5[%c0_14] : memref<1xf32, #tpu.memory_space<smem>>
      %cst_15 = arith.constant 6.250000e-02 : f32
      %34 = arith.mulf %33, %cst_15 : f32
      %c0_16 = arith.constant 0 : index
      %35 = memref.load %arg4[%c0_16] : memref<1xf32, #tpu.memory_space<smem>>
      memref.store %34, %arg4[%c0_16] : memref<1xf32, #tpu.memory_space<smem>>
    } else {
    }
    return
  }
  func.func @transform_0(%arg0: i32) -> (i32, i32) {
    %c0_i32 = arith.constant 0 : i32
    %c0_i32_0 = arith.constant 0 : i32
    return %arg0, %c0_i32 : i32, i32
  }
  func.func @transform_1(%arg0: i32) -> (i32, i32) {
    %c0_i32 = arith.constant 0 : i32
    %c0_i32_0 = arith.constant 0 : i32
    return %arg0, %c0_i32 : i32, i32
  }
  func.func @transform_2(%arg0: i32) -> (i32, i32) {
    %c0_i32 = arith.constant 0 : i32
    %c0_i32_0 = arith.constant 0 : i32
    return %arg0, %c0_i32 : i32, i32
  }
  func.func @transform_3(%arg0: i32) -> i32 {
    %c0_i32 = arith.constant 0 : i32
    %c0_i32_0 = arith.constant 0 : i32
    return %c0_i32 : i32
  }
}

</mosaic_0001>

<bundles_post_ra>
// kernel: contrastive_loss.1
= control target key start
LH: loop header
LB: loop body
LE: loop exit
PB: predicated region body
PF: predicated region fallthrough
CT: control target
= control target key end

     0   :  { %8 = vsyncpa [#allocation4], 0  ;;  %s782_s0 = inlined_call_operand.hbm [shape: f32[16,256], index: 0, kind: input, shape index: {}]   ;;  %s783_s1 = inlined_call_operand.hbm [shape: f32[16,256], index: 1, kind: input, shape index: {}]   ;;  %s784_s2 = inlined_call_operand.vmem [shape: f32[16,1], index: 2, kind: input, shape index: {}]   ;;  %s785_s3 = inlined_call_operand.hbm [shape: f32[1], index: 3, kind: output, shape index: {}]  }
   0x1   :  { %10 = vsyncpa [#allocation4 + $0x1], 0 }
   0x2   :  { %11 = vsyncpa [#allocation7], 0 }
   0x3   :  { %13 = vsyncpa [#allocation7 + $0x1], 0 }
   0x4   :  { %14 = vsyncpa [#allocation5], 0  ;;  %s601_s12 = smov 0   ;;  %s603_s13 = smov 0  }
   0x5   :  { %s605_s14 = smov 0   ;;  %s607_s15 = smov 0  }
   0x6 LB: > { %s620_s16 = sadd.s32 4294967295, %s575_s15   ;;  %s623_s17 = sadd.s32 1, %s575_s15   ;;  %s575_s15 = sphi %s607_s15, %s799_s15   ;;  %s571_s14 = sphi %s605_s14, %s798_s14   ;;  %s567_s13 = sphi %s603_s13, %s797_s13   ;;  %s563_s12 = sphi %s601_s12, %s796_s12  }
   0x7   : > { %s24_s18 = ssub.s32 %s575_s15, %s623_s17  ;;  %s27_s19 = sadd.s32 1, %s571_s14 }
   0x8   : > { %p25_p0 = scmp.eq.s32.totalorder %s24_s18, 0  ;;  %p34_p1 = scmp.ne.s32.totalorder %s571_s14, %s567_s13 }
   0x9   : > { %p35_p2 = scmp.eq.s32.totalorder %s575_s15, 0  ;;  %p40_p3 = scmp.ne.s32.totalorder %s567_s13, %s563_s12 }
   0xa   : > { %s633_s20 = scalar_select %p25_p0, %s571_s14, %s27_s19  }
   0xb   : > { %p36_p4 = por %p35_p2, %p34_p1  ;;  %p786_p5 = scmp.eq.s32.totalorder %s620_s16, 0 }
   0xc   : > { %p420_p6 = scmp.lt.s32.totalorder %s575_s15, 2  ;;  %s644_s22 = sand.u32 1, %s571_s14  }
   0xd   : > { %p639_p7 = por %p786_p5, %p40_p3  ;;  %s381_s23 = sshll.u32 %s644_s22, 4 }
   0xe   : > { %s397_s24 = sshll.u32 %s575_s15, 8  ;;  %s141_s28 = scalar_lea.vmem [#allocation3], %s381_s23 }
   0xf   : > { %s788_s21 = scalar_select %p639_p7, 1, 0 }
  0x10   : > { %s653_s27 = scalar_lea.hbm %s782_s0, %s397_s24  ;;  %s149_s29 = sshll.u32 %s141_s28, 4  ;;  %s657_s29 = int_to_ptr.vmem [resolvable:$true] %s149_s29 }
  0x11   : > { %p659_p8 = pnand %p420_p6, %p36_p4  ;;  %s138_s4 = scalar_lea.sflag [#allocation4], %s644_s22 }
  0x12   : > { %s461_s5 = scalar_lea.hbm %s653_s27, 256  ;;  %s466_s8 = scalar_lea.hbm %s782_s0, 512 }
  0x13   : > { %p462_p11 = scmp.ne.s32.totalorder %s653_s27, %s461_s5  ;;  %p463_p12 = pneg %p659_p8 }
  0x14   : > { %p467_p1 = scmp.lt.u32.totalorder %s653_s27, %s782_s0  ;;  %p468_p2 = scmp.lt.u32.totalorder %s466_s8, %s461_s5 }
  0x15   : > { %p464_p13 = pnand %p463_p12, %p462_p11  ;;  %p470_p4 = scmp.lt.u32.totalorder %s461_s5, %s653_s27 }
  0x16   : > { %p469_p3 = por %p468_p2, %p467_p1 }
  0x17   : > { %p465_p0 = pneg %p464_p13 }
  0x18   : > { %p471_p6 = por %p470_p4, %p469_p3 }
  0x1a   : > { %p472_p5 = pnand %p471_p6, %p465_p0 }
  0x1c   : > { %475 = shalt.err (!%p472_p5)
}
  0x1d   : > { %s476_s11 = scalar_lea.vmem %s657_s29, 256  ;;  %s577_s12 = smov [#allocation3]  }
  0x1e   : > { %p477_p11 = scmp.ne.s32.totalorder %s657_s29, %s476_s11  ;;  %s481_s18 = sshll.u32 %s577_s12, 4  ;;  %s482_s18 = int_to_ptr.vmem [resolvable:$false] %s481_s18 }
  0x1f   : > { %s483_s19 = scalar_lea.vmem %s482_s18, 512  ;;  %p484_p10 = scmp.lt.s32.totalorder %s657_s29, %s482_s18 }
  0x20   : > { %p479_p13 = pnand %p477_p11, %p463_p12  ;;  %p485_p1 = scmp.lt.s32.totalorder %s483_s19, %s476_s11 }
  0x22   : > { %p480_p9 = pneg %p479_p13  ;;  %p486_p2 = por %p485_p1, %p484_p10 }
  0x24   : > { %p487_p3 = pnand %p486_p2, %p480_p9 }
  0x26   : > { %490 = shalt.err (!%p487_p3)
}
  0x27   : > { %416 = dma.hbm_to_vmem [thread:$0]  (!%p659_p8), %s653_s27, 256, %s657_s29, %s138_s4  }
  0x28   : > { %p790_p5 = scmp.lt.s32.totalorder %s575_s15, 3  ;;  %p791_p0 = scmp.ge.s32.totalorder %s575_s15, 1 }
  0x29   : > { %s704_s5 = scalar_lea.hbm %s783_s1, %s397_s24  ;;  %s160_s6 = scalar_lea.vmem [#allocation6], %s381_s23 }
  0x2a   : > { %p695_p4 = pnand %p791_p0, %p790_p5  ;;  %s168_s7 = sshll.u32 %s160_s6, 4  ;;  %s169_s7 = int_to_ptr.vmem [resolvable:$true] %s168_s7 }
  0x2b   : > { %s157_s27 = scalar_lea.sflag [#allocation7], %s644_s22  ;;  %s491_s29 = scalar_lea.hbm %s704_s5, 256 }
  0x2c   : > { %s792_s25 = scalar_select %p695_p4, 1, 0 }
  0x2d   : > { %p492_p9 = scmp.ne.s32.totalorder %s704_s5, %s491_s29  ;;  %s496_s24 = scalar_lea.hbm %s783_s1, 512 }
  0x2e   : > { %p497_p11 = scmp.lt.u32.totalorder %s704_s5, %s783_s1  ;;  %p498_p13 = scmp.lt.u32.totalorder %s496_s24, %s491_s29 }
  0x2f   : > { %p494_p10 = pnand %p492_p9, %p463_p12  ;;  %p500_p2 = scmp.lt.u32.totalorder %s491_s29, %s704_s5 }
  0x30   : > { %p499_p1 = por %p498_p13, %p497_p11 }
  0x31   : > { %p495_p6 = pneg %p494_p10 }
  0x32   : > { %p501_p3 = por %p500_p2, %p499_p1 }
  0x34   : > { %p502_p5 = pnand %p501_p3, %p495_p6 }
  0x36   : > { %505 = shalt.err (!%p502_p5)
}
  0x37   : > { %s506_s22 = scalar_lea.vmem %s169_s7, 256  ;;  %s578_s23 = smov [#allocation6]  }
  0x38   : > { %p507_p0 = scmp.ne.s32.totalorder %s169_s7, %s506_s22  ;;  %s511_s10 = sshll.u32 %s578_s23, 4  ;;  %s512_s10 = int_to_ptr.vmem [resolvable:$false] %s511_s10 }
  0x39   : > { %s513_s11 = scalar_lea.vmem %s512_s10, 512  ;;  %p514_p7 = scmp.lt.s32.totalorder %s169_s7, %s512_s10 }
  0x3a   : > { %p509_p9 = pnand %p507_p0, %p463_p12  ;;  %p515_p4 = scmp.lt.s32.totalorder %s513_s11, %s506_s22 }
  0x3c   : > { %p510_p10 = pneg %p509_p9  ;;  %p516_p11 = por %p515_p4, %p514_p7 }
  0x3e   : > { %p517_p13 = pnand %p516_p11, %p510_p10 }
  0x40   : > { %520 = shalt.err (!%p517_p13)
}
  0x41   : > { %419 = dma.hbm_to_vmem [thread:$0]  (!%p659_p8), %s704_s5, 256, %s169_s7, %s157_s27  }
  0x42   : > { %p793_p6 = scmp.ne.s32.totalorder %s792_s25, 0 }
  0x43   : > { %s186_s12 = sand.u32 (!%p793_p6), 1, %s567_s13   ;;  %p794_p12 = scmp.ne.s32.totalorder (!%p793_p6), %s788_s21, 0 }
  0x44   : > { %184 = sbr.rel (%p793_p6) target bundleno = 471 (0x1d7), region = 32  ;;  %s388_s18 = sshll.u32 (!%p793_p6), %s186_s12, 4 }
  0x45   : > { %s187_s19 = scalar_lea.sflag (!%p793_p6), [#allocation4], %s186_s12  ;;  %s190_s26 = scalar_lea.vmem (!%p793_p6), [#allocation3], %s388_s18 }
  0x4b   : > { %550 = dma.done.wait (%p794_p12), %s187_s19, 256  }
  0x4c   : > { %552 = vsyncadd (%p794_p12), %s187_s19, 4294967040  ;;  %s196_s28 = scalar_lea.sflag [#allocation7], %s186_s12  ;;  %s199_s6 = scalar_lea.vmem [#allocation6], %s388_s18 }
  0x4d   : > { %554 = dma.done.wait (%p794_p12), %s196_s28, 256  }
  0x4e   : > { %556 = vsyncadd (%p794_p12), %s196_s28, 4294967040  ;;  %v236_v0 = vld [vmem:[%s190_s26] sm:$0xff]  ;;  %v237_v1 = vld [vmem:[%s190_s26 + $0x8] sm:$0xff]  ;;  %p226_p7 = scmp.lt.s32.totalorder %s620_s16, 1  ;;  %vm265_vm2 = vcmask 7168   ;;  %s579_s27 = smov 0.0  }
  0x4f   : > { %v238_v2 = vld [vmem:[%s199_s6] sm:$0xff]  ;;  %v239_v3 = vld [vmem:[%s199_s6 + $0x8] sm:$0xff]  ;;  %p795_p8 = scmp.eq.s32.totalorder %s620_s16, 0  ;;  %p422_p4 = scmp.eq.s32.totalorder %s620_s16, 1 }
  0x50   : > { %v240_v4 = vsub.f32 %v236_v0, %v238_v2  ;;  %v241_v5 = vsub.f32 %v237_v1, %v239_v3  ;;  %s227_s30 = scalar_select %p226_p7, %s620_s16, 1 }
  0x51   : > { %406 = sst [smem:[#allocation2]] (%p795_p8), %s579_s27  ;;  %s521_s22 = scalar_lea.hbm %s785_s3, 16 }
  0x52   : > { %v242_v6 = vadd.f32 1e-06, %v240_v4  ;;  %v243_v7 = vadd.f32 1e-06, %v241_v5  ;;  %s390_s21 = sshll.u32 %s227_s30, 3  ;;  %s264_s29 = sld [smem:[#allocation2]] }
  0x53   : > { %s229_s7 = scalar_lea.vmem %s784_s2, %s390_s21  ;;  %p522_p1 = scmp.ne.s32.totalorder %s785_s3, %s521_s22 }
  0x54   : > { %v244_v8 = vmul.f32 %v242_v6, %v242_v6  ;;  %v245_v9 = vmul.f32 %v243_v7, %v243_v7  ;;  %v256_v17 = vld [vmem:[%s229_s7] sm:$0xff]  ;;  %p527_p5 = scmp.lt.u32.totalorder %s521_s22, %s785_s3 }
  0x55   : > { %v259_v20 = vsub.f32 1.0, %v256_v17  ;;  %p523_p2 = pnand %p522_p1, %p422_p4 }
  0x56   : > { %v246_v10 = vadd.f32 %v245_v9, %v244_v8 }
  0x57   : > { %p524_p3 = pneg %p523_p2 }
  0x58   : > { %247 = vadd.xlane.f32.xlu0 %v246_v10 }
  0x59   : > { %p529_p0 = pnand %p527_p5, %p524_p3 }
  0xe5   : > { %v248_v11 = vpop.xlane.xlu0 %247 }
  0xe6   : > { %459 = vrsqrt.f32 %v248_v11  ;;  %vm251_vm0 = vcmp.eq.f32.partialorder %v248_v11, inf  ;;  %v254_v14 = vand.u32 2147483648, %v248_v11  ;;  %vm253_vm1 = vcmp.eq.f32.partialorder %v248_v11, 0.0 }
  0xe7   : > { %v260_v22 = vmul.f32 %v259_v20, %v248_v11 }
  0xf0   : > { %v460_v12 = vpop.eup %459 }
  0xf1   : > { %v250_v13 = vmul.f32 %v460_v12, %v248_v11 }
  0xf3   : > { %v252_v15 = vsel %vm251_vm0, %v248_v11, %v250_v13 }
  0xf4   : > { %v255_v16 = vsel %vm253_vm1, %v254_v14, %v252_v15 }
  0xf5   : > { %v257_v18 = vsub.f32 0.5, %v255_v16 }
  0xf7   : > { %v258_v19 = vmax.f32 %v257_v18, 0.0 }
  0xf9   : > { %v261_v21 = vmul.f32 %v258_v19, %v256_v17 }
  0xfb   : > { %v262_v23 = vmul.f32 %v261_v21, %v258_v19 }
  0xfd   : > { %v263_v24 = vadd.f32 %v262_v23, %v260_v22 }
  0xff   : > { %v266_v25 = vsel %vm265_vm2, %v263_v24, 0.0 }
 0x100   : > { %267 = vadd.xlane.f32.xlu0 %v266_v25 }
 0x18d   : > { %v268_v26 = vpop.xlane.xlu0 %267 }
 0x18e   : > { %v269_v27 = vrot.slane %v268_v26, 4 }
 0x190   : > { %v270_v28 = vadd.f32 %v269_v27, %v268_v26 }
 0x192   : > { %v271_v29 = vrot.slane %v270_v28, 2 }
 0x194   : > { %v272_v30 = vadd.f32 %v271_v29, %v270_v28 }
 0x196   : > { %v273_v31 = vrot.slane %v272_v30, 1 }
 0x198   : > { %v274_v32 = vadd.f32 %v273_v31, %v272_v30 }
 0x19a   : > { %399 = vpush %v274_v32 }
 0x1cb   : > { %s400_s15 = spop %399 }
 0x1cc   : > { %s276_s4 = sadd.f32 %s400_s15, %s264_s29 }
 0x1ce   : > { %278 = sst [smem:[#allocation2]] %s276_s4  ;;  %s284_s24 = smul.f32 0.0625, %s276_s4 }
 0x1d0   : > { %408 = sst [smem:[#allocation8]] (%p422_p4), %s284_s24 }
 0x1d1   : > { %532 = shalt.err (!%p529_p0)
}
 0x1d2   : > { %s580_s18 = smov [#allocation8]  }
 0x1d3   : > { %410 = dma.smem_to_hbm (%p422_p4), %s580_s18, 16, %s785_s3, [#allocation5]  }
 0x1d4   : > { %558 = dma.done.wait (%p422_p4), [#allocation5], 16  }
 0x1d5   : > { %560 = vsyncadd (%p422_p4), [#allocation5], 4294967280 }
 0x1d6   : > { %300 = sfence }
 0x1d7 PF: > { %p17_p9 = scmp.ge.s32.totalorder %s623_s17, 4   ;;  %s796_s12 = smov %s567_s13 }
 0x1d8   : > { %s797_s13 = smov %s571_s14  ;;  %s798_s14 = smov %s633_s20 }
 0x1d9   : > { %s799_s15 = smov %s623_s17  ;;  %19 = sbr.rel (!%p17_p9) target bundleno = 6 (0x6), region = 96 }
 0x1e0   :  { %306 = vsyncpa [#allocation4], 1 }
 0x1e1   :  { %308 = vsyncpa [#allocation4 + $0x1], 1 }
 0x1e2   :  { %309 = vsyncpa [#allocation7], 1 }
 0x1e3   :  { %311 = vsyncpa [#allocation7 + $0x1], 1 }
 0x1e4   :  { %312 = vsyncpa [#allocation5], 1 }
 0x1e5   :  { %314 = vsyncpa [#allocation5 + $0x1], 1 }

</bundles_post_ra>
